<compile_context>
chip_gen: v5e
topology: v5e:2x2
jax: 0.10.0
libtpu: 0.0.40
codegen_flags: <defaults>
</compile_context>

<pallas_src>
import functools

import jax
import jax.numpy as jnp
from jax.experimental import pallas as pl
from jax.experimental.pallas import tpu as pltpu


TEMPORAL = True          # parameters['temporal_cost']
TEMPORAL_SCALE = 0.5     # parameters['temporal_scaling'] == (lambda x: 0.5 * x)


def _metric_reward_kernel(s1_ref, g1_ref, td1_ref,
                          s2_ref, g2_ref, td2_ref,
                          r1_ref, r2_ref,
                          acc1_ref, acc2_ref,
                          *, temporal, scale, feat_total, feat_block):
    """One (row-tile, feature-tile) grid step for BOTH reward pairs.

    grid = (num_row_tiles [parallel], num_feat_tiles [arbitrary, innermost]).
    Sum-of-squares is accumulated per row in (bm, 1) f32 VMEM scratch; sqrt +
    NaN-gated temporal override + store happen on the last feature step.
    Pure VPU/XLU work, no MXU.
    """
    k = pl.program_id(1)
    nk = pl.num_programs(1)

    @pl.when(k == 0)
    def _init():
        acc1_ref[...] = jnp.zeros_like(acc1_ref)
        acc2_ref[...] = jnp.zeros_like(acc2_ref)

    def accumulate(s_ref, g_ref, acc_ref):
        diff = s_ref[...].astype(jnp.float32) - g_ref[...].astype(jnp.float32)
        if feat_total % feat_block != 0:
            # Partial last feature tile: zero OOB lanes so garbage columns
            # never contaminate the sum of squares.
            col = (k * feat_block
                   + jax.lax.broadcasted_iota(jnp.int32, diff.shape, 1))
            diff = jnp.where(col < feat_total, diff, 0.0)
        acc_ref[...] += jnp.sum(diff * diff, axis=1, keepdims=True)

    accumulate(s1_ref, g1_ref, acc1_ref)
    accumulate(s2_ref, g2_ref, acc2_ref)

    @pl.when(k == nk - 1)
    def _finalize():
        def one(acc_ref, td_ref, r_ref):
            norm = jnp.sqrt(acc_ref[...])                        # (bm, 1)
            if temporal:
                td_s = td_ref[...].astype(jnp.float32) * scale   # temporal_scaling(td)
                norm = jnp.where(jnp.isnan(td_s), norm, td_s)
            r_ref[...] = norm.astype(r_ref.dtype)
        one(acc1_ref, td1_ref, r1_ref)
        one(acc2_ref, td2_ref, r2_ref)
        # NOTE: rows past B in a partial last row tile hold garbage; they are
        # per-row quantities and are discarded by the masked output writeback.


def _vmem_capacity_bytes():
    try:
        return int(pltpu.get_tpu_info().vmem_capacity_bytes)
    except Exception:
        return 64 << 20   # conservative fallback: v7x per-TC VMEM


def _plan_tiles(batch, feat, itemsize, *, block_rows=None, feat_block=None):
    """Pick (bm, dk, vmem_limit_bytes) for the (row, feature) tiling."""
    vmem_cap = _vmem_capacity_bytes()
    # Budget for the pipelined feature operands; scales with the generation's
    # VMEM (v7x ~44 MiB of 64; v5e/v6e capped at 72 MiB of 128).
    budget = min(int(vmem_cap * 0.7), 72 << 20)

    def rows_for(dk):
        # 4 feature operands (s1, g1, s2, g2), double buffered, real itemsize.
        return budget // max(1, dk * itemsize * 4 * 2)

    # --- feature (lane) tile ---
    if feat_block is None:
        dk = feat
        if feat > 512 and rows_for(dk) < 256:
            # Tile the feature axis so the row tile stays >= ~512.
            dk = budget // max(1, 512 * itemsize * 4 * 2)
            dk = max(128, min((dk // 128) * 128, feat))
    else:
        dk = max(1, min(int(feat_block), feat))
    if dk < feat:
        dk = min(max(128, (dk // 128) * 128), feat)   # lane-block legality
    if dk >= feat:
        dk = feat

    # --- batch (sublane) tile ---
    if block_rows is None:
        bm = max(8, min((rows_for(dk) // 8) * 8, 2048))
        if bm >= batch:
            if batch >= 16:
                # >= 2 independent row tiles so the 'parallel' axis can be
                # split across v7x's two TensorCores (neutral on v5e/v6e).
                bm = max(8, ((pl.cdiv(batch, 2) + 7) // 8) * 8)
            else:
                bm = batch
    else:
        bm = min(int(block_rows), batch)
        if bm < batch:
            bm = max(8, (bm // 8) * 8)

    # vmem limit from the actual block footprint (+~30% headroom; floor 16 MiB
    # so v5e's 16 MiB scoped default is always explicitly overridden).
    feat_bytes = 4 * bm * dk * itemsize * 2   # 4 inputs, double buffered
    col_bytes = 2 * bm * 4 * 2                # td columns
    out_bytes = 2 * bm * 4 * 2                # reward columns
    scratch_bytes = 2 * bm * 4                # sum-of-squares accumulators
    limit = int((feat_bytes + col_bytes + out_bytes + scratch_bytes) * 1.3)
    limit = max(16 << 20, min(limit + (1 << 20), int(vmem_cap * 0.9)))

    return bm, dk, limit


def metric_reward_forward(inputs, outputs, *, temporal=TEMPORAL,
                          scale=TEMPORAL_SCALE, block_rows=None,
                          feat_block=None):
    """Mirror of MetricReward.forward: dicts in, dict of rewards out.

    outputs['s1'|'g1'|'s2'|'g2'] : (B, D) float32 / bfloat16
    inputs['td1'|'td2']          : (B,)   float (may contain NaN)
    returns {'r1': (B,), 'r2': (B,)} float32
    """
    s1, g1 = outputs["s1"], outputs["g1"]
    s2, g2 = outputs["s2"], outputs["g2"]
    td1, td2 = inputs["td1"], inputs["td2"]
    assert s1.shape == g1.shape == s2.shape == g2.shape
    B, D = s1.shape

    bm, dk, vmem_limit = _plan_tiles(B, D, s1.dtype.itemsize,
                                     block_rows=block_rows,
                                     feat_block=feat_block)
    grid = (pl.cdiv(B, bm), pl.cdiv(D, dk))

    feat_spec = pl.BlockSpec((bm, dk), lambda i, k: (i, k))
    col_spec = pl.BlockSpec((bm, 1), lambda i, k: (i, 0))

    kernel = functools.partial(_metric_reward_kernel, temporal=temporal,
                               scale=scale, feat_total=D, feat_block=dk)

    r1, r2 = pl.pallas_call(
        kernel,
        out_shape=(jax.ShapeDtypeStruct((B, 1), jnp.float32),
                   jax.ShapeDtypeStruct((B, 1), jnp.float32)),
        grid_spec=pltpu.PrefetchScalarGridSpec(
            num_scalar_prefetch=0,
            grid=grid,
            in_specs=[feat_spec, feat_spec, col_spec,
                      feat_spec, feat_spec, col_spec],
            out_specs=[col_spec, col_spec],
            scratch_shapes=[pltpu.VMEM((bm, 1), jnp.float32),
                            pltpu.VMEM((bm, 1), jnp.float32)],
        ),
        compiler_params=pltpu.CompilerParams(
            dimension_semantics=("parallel", "arbitrary"),
            vmem_limit_bytes=vmem_limit,
        ),
    )(s1, g1, td1.reshape(B, 1), s2, g2, td2.reshape(B, 1))

    return {"r1": r1.reshape(B), "r2": r2.reshape(B)}


def _reference(inputs, outputs, *, temporal=TEMPORAL, scale=TEMPORAL_SCALE):
    """Pure-JAX reference of the PyTorch forward."""
    def one(s, g, td):
        r = jnp.linalg.norm(s.astype(jnp.float32) - g.astype(jnp.float32), axis=1)
        if temporal:
            td_s = td.astype(jnp.float32) * scale
            r = jnp.where(jnp.isnan(td_s), r, td_s)
        return r
    return {"r1": one(outputs["s1"], outputs["g1"], inputs["td1"]),
            "r2": one(outputs["s2"], outputs["g2"], inputs["td2"])}


if __name__ == "__main__":
    key = jax.random.PRNGKey(0)
    ks = jax.random.split(key, 6)

    def make_case(B, D, dtype=jnp.float32):
        s1 = jax.random.normal(ks[0], (B, D)).astype(dtype)
        g1 = jax.random.normal(ks[1], (B, D)).astype(dtype)
        s2 = jax.random.normal(ks[2], (B, D)).astype(dtype)
        g2 = jax.random.normal(ks[3], (B, D)).astype(dtype)
        # Temporal distances with NaNs so both branches of the NaN gate run.
        td1 = jax.random.uniform(ks[4], (B,), dtype=jnp.float32)
        td1 = td1.at[::2].set(jnp.nan)
        td2 = jax.random.uniform(ks[5], (B,), dtype=jnp.float32)
        td2 = td2.at[1::3].set(jnp.nan)
        return ({"td1": td1, "td2": td2},
                {"s1": s1, "g1": g1, "s2": s2, "g2": g2})

    def check(inputs, outputs, atol=1e-5, **kw):
        ref = _reference(inputs, outputs)
        out = metric_reward_forward(inputs, outputs, **kw)
        jax.block_until_ready(out)
        B = outputs["s1"].shape[0]
        assert out["r1"].shape == (B,) and out["r2"].shape == (B,)
        assert jnp.allclose(out["r1"], ref["r1"], atol=atol, rtol=1e-4)
        assert jnp.allclose(out["r2"], ref["r2"], atol=atol, rtol=1e-4)

    # (1) auto plan: >= 2 row tiles, full-D feature block.
    inp, outp = make_case(128, 256)
    check(inp, outp)
    # (2) explicit small row tiles -> 4-step parallel grid.
    check(inp, outp, block_rows=32)
    # (3) feature-axis tiling path (innermost 'arbitrary' axis + accumulator).
    check(inp, outp, feat_block=128)
    # (4) ragged shapes: B not a multiple of 8, D not a multiple of feat_block
    #     (partial row tile + lane-masked partial feature tile).
    inp, outp = make_case(50, 200)
    check(inp, outp, block_rows=16, feat_block=128)
    # (5) bf16 inputs straight from HBM (halved read traffic); kernel upcasts.
    inp, outp = make_case(64, 256, dtype=jnp.bfloat16)
    check(inp, outp, atol=1e-2)

    print("KERNEL_OK")
</pallas_src>

<mosaic_0001>
module attributes {stable_mosaic.version = 11 : i64} {
  func.func @_metric_reward_kernel(%arg0: i32, %arg1: i32, %arg2: memref<64x256xf32, #tpu.memory_space<vmem>>, %arg3: memref<64x256xf32, #tpu.memory_space<vmem>>, %arg4: memref<64x1xf32, #tpu.memory_space<vmem>>, %arg5: memref<64x256xf32, #tpu.memory_space<vmem>>, %arg6: memref<64x256xf32, #tpu.memory_space<vmem>>, %arg7: memref<64x1xf32, #tpu.memory_space<vmem>>, %arg8: memref<64x1xf32, #tpu.memory_space<vmem>>, %arg9: memref<64x1xf32, #tpu.memory_space<vmem>>, %arg10: memref<64x1xf32, #tpu.memory_space<vmem>>, %arg11: memref<64x1xf32, #tpu.memory_space<vmem>>) attributes {dimension_semantics = [#tpu.dimension_semantics<parallel>, #tpu.dimension_semantics<arbitrary>], iteration_bounds = array<i64: 2, 1>, scalar_prefetch = 0 : i64, scratch_operands = 2 : i64, tpu.core_type = #tpu.core_type<tc>, window_params = [{transform_indices = @transform_0, window_bounds = array<i64: 64, 256>}, {transform_indices = @transform_1, window_bounds = array<i64: 64, 256>}, {transform_indices = @transform_2, window_bounds = array<i64: 64, 1>}, {transform_indices = @transform_3, window_bounds = array<i64: 64, 256>}, {transform_indices = @transform_4, window_bounds = array<i64: 64, 256>}, {transform_indices = @transform_5, window_bounds = array<i64: 64, 1>}, {transform_indices = @transform_6, window_bounds = array<i64: 64, 1>}, {transform_indices = @transform_7, window_bounds = array<i64: 64, 1>}]} {
    %c0_i32 = arith.constant 0 : i32
    %0 = arith.cmpi eq, %arg1, %c0_i32 : i32
    %1 = arith.extui %0 : i1 to i32
    %c0_i32_0 = arith.constant 0 : i32
    %2 = arith.cmpi ne, %1, %c0_i32_0 : i32
    scf.if %2 {
      %cst_19 = arith.constant 0.000000e+00 : f32
      %24 = vector.broadcast %cst_19 : f32 to vector<64x1xf32>
      %c0_20 = arith.constant 0 : index
      %c0_21 = arith.constant 0 : index
      %25 = vector.load %arg10[%c0_20, %c0_21] : memref<64x1xf32, #tpu.memory_space<vmem>>, vector<64x1xf32>
      tpu.vector_store %arg10[%c0_20, %c0_21], %24 {strides = array<i32>} : memref<64x1xf32, #tpu.memory_space<vmem>>, vector<64x1xf32>,
      %cst_22 = arith.constant 0.000000e+00 : f32
      %26 = vector.broadcast %cst_22 : f32 to vector<64x1xf32>
      %c0_23 = arith.constant 0 : index
      %c0_24 = arith.constant 0 : index
      %27 = vector.load %arg11[%c0_23, %c0_24] : memref<64x1xf32, #tpu.memory_space<vmem>>, vector<64x1xf32>
      tpu.vector_store %arg11[%c0_23, %c0_24], %26 {strides = array<i32>} : memref<64x1xf32, #tpu.memory_space<vmem>>, vector<64x1xf32>,
    } else {
    }
    %c0 = arith.constant 0 : index
    %c0_1 = arith.constant 0 : index
    %3 = vector.load %arg2[%c0, %c0_1] : memref<64x256xf32, #tpu.memory_space<vmem>>, vector<64x256xf32>
    %c0_2 = arith.constant 0 : index
    %c0_3 = arith.constant 0 : index
    %4 = vector.load %arg3[%c0_2, %c0_3] : memref<64x256xf32, #tpu.memory_space<vmem>>, vector<64x256xf32>
    %5 = arith.subf %3, %4 : vector<64x256xf32>
    %c0_4 = arith.constant 0 : index
    %c0_5 = arith.constant 0 : index
    %6 = vector.load %arg10[%c0_4, %c0_5] : memref<64x1xf32, #tpu.memory_space<vmem>>, vector<64x1xf32>
    %7 = arith.mulf %5, %5 : vector<64x256xf32>
    %cst = arith.constant dense<0.000000e+00> : vector<64xf32>
    %8 = vector.multi_reduction <add>, %7, %cst [1] : vector<64x256xf32> to vector<64xf32>
    %9 = vector.shape_cast %8 : vector<64xf32> to vector<64x1xf32>
    %10 = arith.addf %6, %9 : vector<64x1xf32>
    %c0_6 = arith.constant 0 : index
    %c0_7 = arith.constant 0 : index
    %11 = vector.load %arg10[%c0_6, %c0_7] : memref<64x1xf32, #tpu.memory_space<vmem>>, vector<64x1xf32>
    tpu.vector_store %arg10[%c0_6, %c0_7], %10 {strides = array<i32>} : memref<64x1xf32, #tpu.memory_space<vmem>>, vector<64x1xf32>,
    %c0_8 = arith.constant 0 : index
    %c0_9 = arith.constant 0 : index
    %12 = vector.load %arg5[%c0_8, %c0_9] : memref<64x256xf32, #tpu.memory_space<vmem>>, vector<64x256xf32>
    %c0_10 = arith.constant 0 : index
    %c0_11 = arith.constant 0 : index
    %13 = vector.load %arg6[%c0_10, %c0_11] : memref<64x256xf32, #tpu.memory_space<vmem>>, vector<64x256xf32>
    %14 = arith.subf %12, %13 : vector<64x256xf32>
    %c0_12 = arith.constant 0 : index
    %c0_13 = arith.constant 0 : index
    %15 = vector.load %arg11[%c0_12, %c0_13] : memref<64x1xf32, #tpu.memory_space<vmem>>, vector<64x1xf32>
    %16 = arith.mulf %14, %14 : vector<64x256xf32>
    %cst_14 = arith.constant dense<0.000000e+00> : vector<64xf32>
    %17 = vector.multi_reduction <add>, %16, %cst_14 [1] : vector<64x256xf32> to vector<64xf32>
    %18 = vector.shape_cast %17 : vector<64xf32> to vector<64x1xf32>
    %19 = arith.addf %15, %18 : vector<64x1xf32>
    %c0_15 = arith.constant 0 : index
    %c0_16 = arith.constant 0 : index
    %20 = vector.load %arg11[%c0_15, %c0_16] : memref<64x1xf32, #tpu.memory_space<vmem>>, vector<64x1xf32>
    tpu.vector_store %arg11[%c0_15, %c0_16], %19 {strides = array<i32>} : memref<64x1xf32, #tpu.memory_space<vmem>>, vector<64x1xf32>,
    %c0_i32_17 = arith.constant 0 : i32
    %21 = arith.cmpi eq, %arg1, %c0_i32_17 : i32
    %22 = arith.extui %21 : i1 to i32
    %c0_i32_18 = arith.constant 0 : i32
    %23 = arith.cmpi ne, %22, %c0_i32_18 : i32
    scf.if %23 {
      %c0_19 = arith.constant 0 : index
      %c0_20 = arith.constant 0 : index
      %24 = vector.load %arg10[%c0_19, %c0_20] : memref<64x1xf32, #tpu.memory_space<vmem>>, vector<64x1xf32>
      %25 = math.sqrt %24 : vector<64x1xf32>
      %c0_21 = arith.constant 0 : index
      %c0_22 = arith.constant 0 : index
      %26 = vector.load %arg4[%c0_21, %c0_22] : memref<64x1xf32, #tpu.memory_space<vmem>>, vector<64x1xf32>
      %cst_23 = arith.constant 5.000000e-01 : f32
      %27 = vector.broadcast %cst_23 : f32 to vector<64x1xf32>
      %28 = arith.mulf %26, %27 : vector<64x1xf32>
      %29 = arith.cmpf one, %28, %28 : vector<64x1xf32>
      %30 = arith.select %29, %25, %28 : vector<64x1xi1>, vector<64x1xf32>
      %c0_24 = arith.constant 0 : index
      %c0_25 = arith.constant 0 : index
      %31 = vector.load %arg8[%c0_24, %c0_25] : memref<64x1xf32, #tpu.memory_space<vmem>>, vector<64x1xf32>
      tpu.vector_store %arg8[%c0_24, %c0_25], %30 {strides = array<i32>} : memref<64x1xf32, #tpu.memory_space<vmem>>, vector<64x1xf32>,
      %c0_26 = arith.constant 0 : index
      %c0_27 = arith.constant 0 : index
      %32 = vector.load %arg11[%c0_26, %c0_27] : memref<64x1xf32, #tpu.memory_space<vmem>>, vector<64x1xf32>
      %33 = math.sqrt %32 : vector<64x1xf32>
      %c0_28 = arith.constant 0 : index
      %c0_29 = arith.constant 0 : index
      %34 = vector.load %arg7[%c0_28, %c0_29] : memref<64x1xf32, #tpu.memory_space<vmem>>, vector<64x1xf32>
      %cst_30 = arith.constant 5.000000e-01 : f32
      %35 = vector.broadcast %cst_30 : f32 to vector<64x1xf32>
      %36 = arith.mulf %34, %35 : vector<64x1xf32>
      %37 = arith.cmpf one, %36, %36 : vector<64x1xf32>
      %38 = arith.select %37, %33, %36 : vector<64x1xi1>, vector<64x1xf32>
      %c0_31 = arith.constant 0 : index
      %c0_32 = arith.constant 0 : index
      %39 = vector.load %arg9[%c0_31, %c0_32] : memref<64x1xf32, #tpu.memory_space<vmem>>, vector<64x1xf32>
      tpu.vector_store %arg9[%c0_31, %c0_32], %38 {strides = array<i32>} : memref<64x1xf32, #tpu.memory_space<vmem>>, vector<64x1xf32>,
    } else {
    }
    return
  }
  func.func @transform_0(%arg0: i32, %arg1: i32) -> (i32, i32) {
    %c0_i32 = arith.constant 0 : i32
    return %arg0, %arg1 : i32, i32
  }
  func.func @transform_1(%arg0: i32, %arg1: i32) -> (i32, i32) {
    %c0_i32 = arith.constant 0 : i32
    return %arg0, %arg1 : i32, i32
  }
  func.func @transform_2(%arg0: i32, %arg1: i32) -> (i32, i32) {
    %c0_i32 = arith.constant 0 : i32
    %c0_i32_0 = arith.constant 0 : i32
    return %arg0, %c0_i32 : i32, i32
  }
  func.func @transform_3(%arg0: i32, %arg1: i32) -> (i32, i32) {
    %c0_i32 = arith.constant 0 : i32
    return %arg0, %arg1 : i32, i32
  }
  func.func @transform_4(%arg0: i32, %arg1: i32) -> (i32, i32) {
    %c0_i32 = arith.constant 0 : i32
    return %arg0, %arg1 : i32, i32
  }
  func.func @transform_5(%arg0: i32, %arg1: i32) -> (i32, i32) {
    %c0_i32 = arith.constant 0 : i32
    %c0_i32_0 = arith.constant 0 : i32
    return %arg0, %c0_i32 : i32, i32
  }
  func.func @transform_6(%arg0: i32, %arg1: i32) -> (i32, i32) {
    %c0_i32 = arith.constant 0 : i32
    %c0_i32_0 = arith.constant 0 : i32
    return %arg0, %c0_i32 : i32, i32
  }
  func.func @transform_7(%arg0: i32, %arg1: i32) -> (i32, i32) {
    %c0_i32 = arith.constant 0 : i32
    %c0_i32_0 = arith.constant 0 : i32
    return %arg0, %c0_i32 : i32, i32
  }
}

</mosaic_0001>

<bundles_post_ra>
// kernel: tpu_custom_call.1
= control target key start
LH: loop header
LB: loop body
LE: loop exit
PB: predicated region body
PF: predicated region fallthrough
CT: control target
= control target key end

     0   :  { %s2187_s0 = inlined_call_operand.vmem [shape: f32[128,256], index: 0, kind: input, shape index: {}]   ;;  %s2188_s1 = inlined_call_operand.hbm [shape: f32[128,256], index: 1, kind: input, shape index: {}]   ;;  %s2189_s2 = inlined_call_operand.vmem [shape: f32[128,1], index: 2, kind: input, shape index: {}]   ;;  %s2190_s3 = inlined_call_operand.hbm [shape: f32[128,256], index: 3, kind: input, shape index: {}]   ;;  %s2191_s4 = inlined_call_operand.hbm [shape: f32[128,256], index: 4, kind: input, shape index: {}]   ;;  %s2192_s5 = inlined_call_operand.vmem [shape: f32[128,1], index: 5, kind: input, shape index: {}]   ;;  %s2193_s6 = inlined_call_operand.vmem [shape: f32[128,1], index: 6, kind: output, shape index: {0}]   ;;  %s2194_s7 = inlined_call_operand.vmem [shape: f32[128,1], index: 7, kind: output, shape index: {1}]  }
   0x1   :  { %2199 = sst [smem:[#allocation15_spill]] %s2190_s3 }
   0x2   :  { %2200 = sst [smem:[#allocation16_spill]] %s2194_s7 }
   0x3   :  { %13 = vsyncpa [#allocation5], 0 }
   0x4   :  { %15 = vsyncpa [#allocation5 + $0x1], 0 }
   0x5   :  { %16 = vsyncpa [#allocation7], 0 }
   0x6   :  { %18 = vsyncpa [#allocation7 + $0x1], 0  ;;  %s1585_s24 = smov 0   ;;  %s1587_s25 = smov 0  }
   0x7   :  { %s1589_s26 = smov 0   ;;  %s1591_s27 = smov 0  }
   0x8   :  { %s1593_s28 = smov 0   ;;  %s1595_s29 = smov 0  }
   0x9 LB: > { %2201 = sst [smem:[#allocation11_spill]] %s1528_s26  ;;  %s2195_s30 = sadd.s32 4294967295, %s1540_s29   ;;  %s1540_s29 = sphi %s1595_s29, %s24_s29   ;;  %s1536_s28 = sphi %s1593_s28, %s2215_s28   ;;  %s1532_s27 = sphi %s1591_s27, %s2214_s27   ;;  %s1528_s26 = sphi %s1589_s26, %s2213_s26   ;;  %s1524_s25 = sphi %s1587_s25, %s2217_s25   ;;  %s1520_s24 = sphi %s1585_s24, %s2216_s24  }
   0xa   : > { %2202 = sst [smem:[#allocation12_spill]] %s1536_s28  ;;  %s36_s8 = sadd.s32 1, %s1536_s28 }
   0xb   : > { %p38_p0 = scmp.ge.s32.totalorder %s36_s8, 2  ;;  %s73_s9 = sadd.s32 1, %s1528_s26 }
   0xc   : > { %p80_p1 = scmp.ne.s32.totalorder %s1528_s26, %s1524_s25  ;;  %p81_p2 = scmp.eq.s32.totalorder %s1540_s29, 0 }
   0xd   : > { %s2219_s8 = smov (%p38_p0, %s36_s8), 0  ;;  %p86_p4 = scmp.ne.s32.totalorder %s1524_s25, %s1520_s24 }
   0xe   : > { %2203 = sst [smem:[#allocation13_spill]] %s2219_s8  ;;  %p82_p3 = por %p81_p2, %p80_p1 }
   0xf   : > { %s68_s10 = ssub.s32 %s1536_s28, %s2219_s8  ;;  %p87_p5 = scmp.eq.s32.totalorder %s2195_s30, 0 }
  0x10   : > { %p71_p6 = scmp.eq.s32.totalorder %s68_s10, 0  ;;  %p1312_p8 = scmp.lt.s32.totalorder %s1540_s29, 2 }
  0x11   : > { %p1626_p7 = por %p87_p5, %p86_p4  ;;  %s285_s13 = sand.u32 1, %s1528_s26  }
  0x12   : > { %s1632_s12 = scalar_select %p71_p6, %s1528_s26, %s73_s9  }
  0x13   : > { %s1636_s14 = sshll.u32 %s1536_s28, 7  ;;  %s1260_s15 = sshll.u32 %s285_s13, 7 }
  0x14   : > { %2205 = sst [smem:[#allocation14_spill]] %s1632_s12  ;;  %p1638_p9 = pnand %p1312_p8, %p82_p3 }
  0x15   : > { %s319_s17 = sand.u32 1, %s1540_s29   ;;  %s2207_s3 = sld [smem:[#allocation15_spill]] }
  0x16   : > { %s323_s21 = scalar_lea.vmem [#allocation6], %s1260_s15  ;;  %p1272_p10 = scmp.ge.s32.totalorder %s1540_s29, 1 }
  0x17   : > { %s334_s22 = sshll.u32 %s323_s21, 4  ;;  %s320_s24 = scalar_lea.sflag [#allocation7], %s319_s17  ;;  %s335_s22 = int_to_ptr.vmem [resolvable:$true] %s334_s22 }
  0x18   : > { %s1542_s9 = smov 256   ;;  %s1543_s10 = smov 16  }
  0x19   : > { %p376_p11 = scmp.lt.s32.totalorder %s1540_s29, 3  ;;  %s289_s21 = scalar_lea.vmem [#allocation4], %s1260_s15 }
  0x1a   : > { %s286_s17 = scalar_lea.sflag [#allocation5], %s285_s13  ;;  %s348_s12 = scalar_lea.vmem [#allocation8], %s1260_s15 }
  0x1b   : > { %s331_s20 = scalar_lea.hbm %s2207_s3, %s1636_s14  ;;  %p1651_p12 = pnand %p1272_p10, %p376_p11 }
  0x1c   : > { %s332_s23 = sshll.u32 %s331_s20, 4  ;;  %s297_s20 = scalar_lea.hbm %s2188_s1, %s1636_s14  ;;  %s333_s23 = int_to_ptr.hbm [resolvable:$true] %s332_s23 }
  0x1d   : > { %1308 = dma.hbm_to_vmem [thread:$0]  (!%p1638_p9), %s333_s23, 2048, %s335_s22, %s320_s24, %s1542_s9, %s1542_s9, %s1543_s10  }
  0x1e   : > { %s300_s3 = sshll.u32 %s289_s21, 4  ;;  %s298_s8 = sshll.u32 %s297_s20, 4  ;;  %s301_s3 = int_to_ptr.vmem [resolvable:$true] %s300_s3  ;;  %s299_s8 = int_to_ptr.hbm [resolvable:$true] %s298_s8 }
  0x1f   : > { %1305 = dma.hbm_to_vmem [thread:$0]  (!%p1638_p9), %s299_s8, 2048, %s301_s3, %s286_s17, %s1542_s9, %s1542_s9, %s1543_s10  }
  0x20   : > { %s356_s23 = scalar_lea.hbm %s2191_s4, %s1636_s14  ;;  %s359_s26 = sshll.u32 %s348_s12, 4  ;;  %s360_s26 = int_to_ptr.vmem [resolvable:$true] %s359_s26 }
  0x21   : > { %s357_s7 = sshll.u32 %s356_s23, 4  ;;  %380 = sbr.rel (%p1651_p12) target bundleno = 255 (0xff), region = 44  ;;  %s358_s7 = int_to_ptr.hbm [resolvable:$true] %s357_s7 }
  0x22   : > { %1311 = dma.hbm_to_vmem [thread:$0]  (!%p1638_p9), %s358_s7, 2048, %s360_s26, %s320_s24, %s1542_s9, %s1542_s9, %s1543_s10  }
  0x23   : > { %s382_s18 = sand.u32 (!%p1651_p12), 1, %s1524_s25  }
  0x24   : > { %s1670_s13 = sshll.u32 (!%p1651_p12), %s382_s18, 7  ;;  %s383_s3 = scalar_lea.sflag (!%p1651_p12), [#allocation5], %s382_s18 }
  0x25   : > { %s1673_s8 = scalar_lea.vmem (!%p1651_p12), [#allocation4], %s1670_s13 }
  0x26   : > { %1511 = dma.done.wait (%p1626_p7), %s383_s3, 2048  }
  0x27   : > { %1513 = vsyncadd (%p1626_p7), %s383_s3, 4294965248  ;;  %s2209_s28 = sadd.s32 4294967295, %s1540_s29   ;;  %s1682_s30 = scalar_lea.vmem [#allocation6], %s1670_s13 }
  0x28   : > { %s392_s7 = sand.u32 1, %s2209_s28  }
  0x29   : > { %s393_s26 = scalar_lea.sflag [#allocation7], %s392_s7 }
  0x2a   : > { %1515 = dma.done.wait (%p1626_p7), %s393_s26, 4096  }
  0x2b   : > { %1517 = vsyncadd (%p1626_p7), %s393_s26, 4294963200  ;;  %s1276_s12 = sshll.u32 %s1532_s27, 3  ;;  %v560_v2 = vld [vmem:[%s1673_s8 + $0x40] sm:$0xff]  ;;  %v561_v3 = vld [vmem:[%s1673_s8 + $0x48] sm:$0xff]  ;;  %s1724_s27 = scalar_lea.vmem [#allocation8], %s1670_s13  ;;  %vm519_vm0 = vcmask 7168  }
  0x2c   : > { %p475_p13 = scmp.lt.s32.totalorder %s1276_s12, 15  ;;  %v556_v8 = vld [vmem:[%s1673_s8 + $0x20] sm:$0xff]  ;;  %v557_v9 = vld [vmem:[%s1673_s8 + $0x28] sm:$0xff]  ;;  %v562_v22 = vld [vmem:[%s1673_s8 + $0x50] sm:$0xff] }
  0x2d   : > { %v552_v15 = vld [vmem:[%s1673_s8] sm:$0xff]  ;;  %v553_v16 = vld [vmem:[%s1673_s8 + $0x8] sm:$0xff]  ;;  %v563_v25 = vld [vmem:[%s1673_s8 + $0x58] sm:$0xff] }
  0x2e   : > { %s2221_s12 = smov (!%p475_p13, %s1276_s12), 15  ;;  %v558_v33 = vld [vmem:[%s1673_s8 + $0x30] sm:$0xff]  ;;  %v559_v34 = vld [vmem:[%s1673_s8 + $0x38] sm:$0xff]  ;;  %v649_v47 = vld [vmem:[%s1682_s30] sm:$0xff] }
  0x2f   : > { %s1295_s14 = sshll.u32 %s2221_s12, 4  ;;  %v554_v41 = vld [vmem:[%s1673_s8 + $0x10] sm:$0xff]  ;;  %v555_v42 = vld [vmem:[%s1673_s8 + $0x18] sm:$0xff]  ;;  %v650_v48 = vld [vmem:[%s1682_s30 + $0x8] sm:$0xff]  ;;  %s1784_s11 = sshll.u32 %s2221_s12, 3 }
  0x30   : > { %s1695_s24 = scalar_lea.vmem %s2187_s0, %s1295_s14  ;;  %v665_v49 = vld [vmem:[%s1724_s27] sm:$0xff]  ;;  %v666_v52 = vld [vmem:[%s1724_s27 + $0x8] sm:$0xff]  ;;  %v566_v57 = vld [vmem:[%s1673_s8 + $0x70] sm:$0xff]  ;;  %s1792_s19 = scalar_lea.vmem %s2189_s2, %s1784_s11 }
  0x31   : > { %v544_v0 = vld [vmem:[%s1695_s24 + $0x40] sm:$0xff]  ;;  %v545_v1 = vld [vmem:[%s1695_s24 + $0x48] sm:$0xff]  ;;  %v546_v20 = vld [vmem:[%s1695_s24 + $0x50] sm:$0xff]  ;;  %s1841_s17 = scalar_lea.vmem %s2192_s5, %s1784_s11  ;;  %s1880_s18 = scalar_lea.vmem %s2193_s6, %s1784_s11 }
  0x32   : > { %v576_v4 = vsub.f32 %v544_v0, %v560_v2  ;;  %v540_v5 = vld [vmem:[%s1695_s24 + $0x20] sm:$0xff]  ;;  %v541_v6 = vld [vmem:[%s1695_s24 + $0x28] sm:$0xff]  ;;  %v577_v7 = vsub.f32 %v545_v1, %v561_v3  ;;  %v547_v21 = vld [vmem:[%s1695_s24 + $0x58] sm:$0xff]  ;;  %v578_v26 = vsub.f32 %v546_v20, %v562_v22  ;;  %v681_v0 = vsub.f32 %v649_v47, %v665_v49 }
  0x33   : > { %v536_v10 = vld [vmem:[%s1695_s24] sm:$0xff]  ;;  %v572_v12 = vsub.f32 %v540_v5, %v556_v8  ;;  %v573_v13 = vsub.f32 %v541_v6, %v557_v9  ;;  %v537_v14 = vld [vmem:[%s1695_s24 + $0x8] sm:$0xff]  ;;  %v542_v27 = vld [vmem:[%s1695_s24 + $0x30] sm:$0xff]  ;;  %v579_v32 = vsub.f32 %v547_v21, %v563_v25  ;;  %v682_v1 = vsub.f32 %v650_v48, %v666_v52 }
  0x34   : > { %v600_v11 = vmul.f32 %v576_v4, %v576_v4  ;;  %v601_v17 = vmul.f32 %v577_v7, %v577_v7  ;;  %v568_v18 = vsub.f32 %v536_v10, %v552_v15  ;;  %v569_v19 = vsub.f32 %v537_v14, %v553_v16  ;;  %v543_v28 = vld [vmem:[%s1695_s24 + $0x38] sm:$0xff]  ;;  %v538_v35 = vld [vmem:[%s1695_s24 + $0x10] sm:$0xff]  ;;  %v548_v59 = vld [vmem:[%s1695_s24 + $0x60] sm:$0xff] }
  0x35   : > { %v596_v23 = vmul.f32 %v572_v12, %v572_v12  ;;  %v597_v24 = vmul.f32 %v573_v13, %v573_v13  ;;  %v602_v37 = vmul.f32 %v578_v26, %v578_v26  ;;  %v574_v38 = vsub.f32 %v542_v27, %v558_v33  ;;  %v539_v40 = vld [vmem:[%s1695_s24 + $0x18] sm:$0xff]  ;;  %v550_v53 = vld [vmem:[%s1695_s24 + $0x70] sm:$0xff]  ;;  %v549_v60 = vld [vmem:[%s1695_s24 + $0x68] sm:$0xff] }
  0x36   : > { %v620_v29 = vadd.f32 %v601_v17, %v600_v11  ;;  %v592_v30 = vmul.f32 %v568_v18, %v568_v18  ;;  %v593_v31 = vmul.f32 %v569_v19, %v569_v19  ;;  %v575_v39 = vsub.f32 %v543_v28, %v559_v34  ;;  %v551_v54 = vld [vmem:[%s1695_s24 + $0x78] sm:$0xff]  ;;  %v564_v61 = vld [vmem:[%s1673_s8 + $0x60] sm:$0xff]  ;;  %v565_v62 = vld [vmem:[%s1673_s8 + $0x68] sm:$0xff] }
  0x37   : > { %v614_v36 = vadd.f32 %v597_v24, %v596_v23  ;;  %v603_v44 = vmul.f32 %v579_v32, %v579_v32  ;;  %v570_v45 = vsub.f32 %v538_v35, %v554_v41  ;;  %v571_v46 = vsub.f32 %v539_v40, %v555_v42  ;;  %v567_v58 = vld [vmem:[%s1673_s8 + $0x78] sm:$0xff]  ;;  %v655_v10 = vld [vmem:[%s1682_s30 + $0x30] sm:$0xff]  ;;  %v653_v16 = vld [vmem:[%s1682_s30 + $0x20] sm:$0xff]  ;;  %s2210_s8 = sld [smem:[#allocation16_spill]] }
  0x38   : > { %621 = vadd.xlane.f32.xlu2 %v620_v29  ;;  %v608_v43 = vadd.f32 %v593_v31, %v592_v30  ;;  %v598_v50 = vmul.f32 %v574_v38, %v574_v38  ;;  %v599_v51 = vmul.f32 %v575_v39, %v575_v39  ;;  %v582_v3 = vsub.f32 %v550_v53, %v566_v57  ;;  %v656_v11 = vld [vmem:[%s1682_s30 + $0x38] sm:$0xff]  ;;  %v671_v12 = vld [vmem:[%s1724_s27 + $0x30] sm:$0xff]  ;;  %v654_v17 = vld [vmem:[%s1682_s30 + $0x28] sm:$0xff] }
  0x39   : > { %615 = vadd.xlane.f32.xlu1 %v614_v36  ;;  %v594_v55 = vmul.f32 %v570_v45, %v570_v45  ;;  %v595_v56 = vmul.f32 %v571_v46, %v571_v46  ;;  %v623_v63 = vadd.f32 %v603_v44, %v602_v37  ;;  %v583_v4 = vsub.f32 %v551_v54, %v567_v58  ;;  %v672_v15 = vld [vmem:[%s1724_s27 + $0x38] sm:$0xff]  ;;  %v669_v20 = vld [vmem:[%s1724_s27 + $0x20] sm:$0xff]  ;;  %v670_v21 = vld [vmem:[%s1724_s27 + $0x28] sm:$0xff] }
  0x3a   : > { %609 = vadd.xlane.f32.xlu0 %v608_v43  ;;  %v617_v2 = vadd.f32 %v599_v51, %v598_v50  ;;  %v580_v6 = vsub.f32 %v548_v59, %v564_v61  ;;  %v581_v7 = vsub.f32 %v549_v60, %v565_v62  ;;  %v705_v8 = vmul.f32 %v681_v0, %v681_v0  ;;  %v651_v22 = vld [vmem:[%s1682_s30 + $0x10] sm:$0xff]  ;;  %v652_v23 = vld [vmem:[%s1682_s30 + $0x18] sm:$0xff]  ;;  %v661_v37 = vld [vmem:[%s1682_s30 + $0x60] sm:$0xff] }
  0x3b   : > { %v611_v5 = vadd.f32 %v595_v56, %v594_v55  ;;  %v706_v9 = vmul.f32 %v682_v1, %v682_v1  ;;  %v606_v13 = vmul.f32 %v582_v3, %v582_v3  ;;  %v607_v14 = vmul.f32 %v583_v4, %v583_v4  ;;  %v667_v24 = vld [vmem:[%s1724_s27 + $0x10] sm:$0xff]  ;;  %v668_v25 = vld [vmem:[%s1724_s27 + $0x18] sm:$0xff]  ;;  %v662_v38 = vld [vmem:[%s1682_s30 + $0x68] sm:$0xff] }
  0x3c   : > { %v604_v18 = vmul.f32 %v580_v6, %v580_v6  ;;  %v605_v19 = vmul.f32 %v581_v7, %v581_v7  ;;  %v687_v27 = vsub.f32 %v655_v10, %v671_v12  ;;  %v688_v28 = vsub.f32 %v656_v11, %v672_v15  ;;  %v677_v39 = vld [vmem:[%s1724_s27 + $0x60] sm:$0xff]  ;;  %v678_v43 = vld [vmem:[%s1724_s27 + $0x68] sm:$0xff]  ;;  %v659_v44 = vld [vmem:[%s1682_s30 + $0x50] sm:$0xff] }
  0x3d   : > { %v721_v26 = vadd.f32 %v706_v9, %v705_v8  ;;  %v629_v29 = vadd.f32 %v607_v14, %v606_v13  ;;  %v685_v30 = vsub.f32 %v653_v16, %v669_v20  ;;  %v686_v31 = vsub.f32 %v654_v17, %v670_v21  ;;  %v660_v45 = vld [vmem:[%s1682_s30 + $0x58] sm:$0xff]  ;;  %v675_v48 = vld [vmem:[%s1724_s27 + $0x50] sm:$0xff]  ;;  %v657_v50 = vld [vmem:[%s1682_s30 + $0x40] sm:$0xff]  ;;  %s1981_s28 = scalar_lea.vmem %s2210_s8, %s1784_s11 }
  0x3e   : > { %v626_v32 = vadd.f32 %v605_v19, %v604_v18  ;;  %v683_v33 = vsub.f32 %v651_v22, %v667_v24  ;;  %v684_v34 = vsub.f32 %v652_v23, %v668_v25  ;;  %v711_v35 = vmul.f32 %v687_v27, %v687_v27  ;;  %v676_v49 = vld [vmem:[%s1724_s27 + $0x58] sm:$0xff]  ;;  %v658_v51 = vld [vmem:[%s1682_s30 + $0x48] sm:$0xff]  ;;  %v673_v52 = vld [vmem:[%s1724_s27 + $0x40] sm:$0xff] }
  0x3f   : > { %v712_v36 = vmul.f32 %v688_v28, %v688_v28  ;;  %v1544_v40 = vmov 0.0   ;;  %v709_v41 = vmul.f32 %v685_v30, %v685_v30  ;;  %v710_v42 = vmul.f32 %v686_v31, %v686_v31  ;;  %v674_v53 = vld [vmem:[%s1724_s27 + $0x48] sm:$0xff]  ;;  %v664_v6 = vld [vmem:[%s1682_s30 + $0x78] sm:$0xff]  ;;  %v679_v7 = vld [vmem:[%s1724_s27 + $0x70] sm:$0xff] }
  0x40   : > { %624 = vadd.xlane.f32.xlu2 %v623_v63  ;;  %524 = vst.msk [vmem:[#allocation2 + $0x20] sm:$0xff] %vm519_vm0, %v1544_v40  ;;  %v707_v46 = vmul.f32 %v683_v33, %v683_v33  ;;  %v708_v47 = vmul.f32 %v684_v34, %v684_v34  ;;  %v693_v55 = vsub.f32 %v661_v37, %v677_v39  ;;  %v680_v8 = vld [vmem:[%s1724_s27 + $0x78] sm:$0xff]  ;;  %v872_v37 = vld [vmem:[%s1792_s19 + $0x20] sm:$0xff] }
  0x41   : > { %618 = vadd.xlane.f32.xlu1 %v617_v2  ;;  %520 = vst.msk [vmem:[#allocation2] sm:$0xff] %vm519_vm0, %v1544_v40  ;;  %v730_v54 = vadd.f32 %v712_v36, %v711_v35  ;;  %v694_v56 = vsub.f32 %v662_v38, %v678_v43  ;;  %v727_v57 = vadd.f32 %v710_v42, %v709_v41  ;;  %v868_v42 = vld [vmem:[%s1792_s19] sm:$0xff] }
  0x42   : > { %612 = vadd.xlane.f32.xlu0 %v611_v5  ;;  %521 = vst.msk [vmem:[#allocation2 + $0x8] sm:$0xff] %vm519_vm0, %v1544_v40  ;;  %v691_v58 = vsub.f32 %v659_v44, %v675_v48  ;;  %v692_v59 = vsub.f32 %v660_v45, %v676_v49  ;;  %v724_v60 = vadd.f32 %v708_v47, %v707_v46  ;;  %v663_v5 = vld [vmem:[%s1682_s30 + $0x70] sm:$0xff]  ;;  %v1807_v45 = vmul.f32 0.5, %v872_v37 }
  0x43   : > { %522 = vst.msk [vmem:[#allocation2 + $0x10] sm:$0xff] %vm519_vm0, %v1544_v40  ;;  %v689_v61 = vsub.f32 %v657_v50, %v673_v52  ;;  %v690_v62 = vsub.f32 %v658_v51, %v674_v53  ;;  %v717_v63 = vmul.f32 %v693_v55, %v693_v55  ;;  %v718_v0 = vmul.f32 %v694_v56, %v694_v56  ;;  %v873_v51 = vld [vmem:[%s1792_s19 + $0x28] sm:$0xff] }
  0x44   : > { %523 = vst.msk [vmem:[#allocation2 + $0x18] sm:$0xff] %vm519_vm0, %v1544_v40  ;;  %v715_v1 = vmul.f32 %v691_v58, %v691_v58  ;;  %v716_v2 = vmul.f32 %v692_v59, %v692_v59  ;;  %v695_v12 = vsub.f32 %v663_v5, %v679_v7  ;;  %v696_v13 = vsub.f32 %v664_v6, %v680_v8  ;;  %v871_v58 = vld [vmem:[%s1792_s19 + $0x18] sm:$0xff] }
  0x45   : > { %525 = vst.msk [vmem:[#allocation2 + $0x28] sm:$0xff] %vm519_vm0, %v1544_v40  ;;  %v713_v3 = vmul.f32 %v689_v61, %v689_v61  ;;  %v714_v4 = vmul.f32 %v690_v62, %v690_v62  ;;  %v739_v9 = vadd.f32 %v718_v0, %v717_v63  ;;  %vm888_vm1 = vcmp.ne.f32.partialorder %v1807_v45, %v1807_v45 }
  0x46   : > { %526 = vst.msk [vmem:[#allocation2 + $0x30] sm:$0xff] %vm519_vm0, %v1544_v40  ;;  %v736_v10 = vadd.f32 %v716_v2, %v715_v1  ;;  %v719_v14 = vmul.f32 %v695_v12, %v695_v12  ;;  %v720_v15 = vmul.f32 %v696_v13, %v696_v13  ;;  %v1829_v1 = vmul.f32 0.5, %v873_v51 }
  0x47   : > { %527 = vst.msk [vmem:[#allocation2 + $0x38] sm:$0xff] %vm519_vm0, %v1544_v40  ;;  %v733_v11 = vadd.f32 %v714_v4, %v713_v3  ;;  %v588_v17 = vld [vmem:[#allocation2 + $0x20] sm:$0xff]  ;;  %v1833_v4 = vmul.f32 0.5, %v871_v58 }
  0x48   : > { %722 = vadd.xlane.f32.xlu2 %v721_v26  ;;  %528 = vst.msk [vmem:[#allocation3] sm:$0xff] %vm519_vm0, %v1544_v40  ;;  %v742_v16 = vadd.f32 %v720_v15, %v719_v14  ;;  %v584_v20 = vld [vmem:[#allocation2] sm:$0xff]  ;;  %vm889_vm10 = vcmp.ne.f32.partialorder %v1829_v1, %v1829_v1 }
  0x49   : > { %630 = vadd.xlane.f32.xlu1 %v629_v29  ;;  %529 = vst.msk [vmem:[#allocation3 + $0x8] sm:$0xff] %vm519_vm0, %v1544_v40  ;;  %v585_v35 = vld [vmem:[#allocation2 + $0x8] sm:$0xff]  ;;  %vm887_vm11 = vcmp.ne.f32.partialorder %v1833_v4, %v1833_v4 }
  0x4a   : > { %627 = vadd.xlane.f32.xlu0 %v626_v32  ;;  %530 = vst.msk [vmem:[#allocation3 + $0x10] sm:$0xff] %vm519_vm0, %v1544_v40  ;;  %v586_v18 = vld [vmem:[#allocation2 + $0x10] sm:$0xff] }
  0x4b   : > { %531 = vst.msk [vmem:[#allocation3 + $0x18] sm:$0xff] %vm519_vm0, %v1544_v40  ;;  %v587_v27 = vld [vmem:[#allocation2 + $0x18] sm:$0xff] }
  0x4c   : > { %532 = vst.msk [vmem:[#allocation3 + $0x20] sm:$0xff] %vm519_vm0, %v1544_v40  ;;  %v589_v26 = vld [vmem:[#allocation2 + $0x28] sm:$0xff] }
  0x4d   : > { %533 = vst.msk [vmem:[#allocation3 + $0x28] sm:$0xff] %vm519_vm0, %v1544_v40  ;;  %v590_v63 = vld [vmem:[#allocation2 + $0x30] sm:$0xff] }
  0x4e   : > { %534 = vst.msk [vmem:[#allocation3 + $0x30] sm:$0xff] %vm519_vm0, %v1544_v40  ;;  %v591_v41 = vld [vmem:[#allocation2 + $0x38] sm:$0xff] }
  0x4f   : > { %535 = vst.msk [vmem:[#allocation3 + $0x38] sm:$0xff] %vm519_vm0, %v1544_v40  ;;  %v697_v39 = vld [vmem:[#allocation3] sm:$0xff]  ;;  %v870_v40 = vld [vmem:[%s1792_s19 + $0x10] sm:$0xff] }
  0x50   : > { %731 = vadd.xlane.f32.xlu2 %v730_v54  ;;  %v1810_v50 = vmul.f32 0.5, %v870_v40 }
  0x51   : > { %728 = vadd.xlane.f32.xlu1 %v727_v57  ;;  %v1816_v57 = vmul.f32 0.5, %v868_v42 }
  0x52   : > { %725 = vadd.xlane.f32.xlu0 %v724_v60  ;;  %v869_v60 = vld [vmem:[%s1792_s19 + $0x8] sm:$0xff]  ;;  %vm886_vm2 = vcmp.ne.f32.partialorder %v1810_v50, %v1810_v50 }
  0x53   : > { %v1835_v5 = vmul.f32 0.5, %v869_v60  ;;  %vm884_vm5 = vcmp.ne.f32.partialorder %v1816_v57, %v1816_v57 }
  0x55   : > { %vm885_vm13 = vcmp.ne.f32.partialorder %v1835_v5, %v1835_v5 }
  0x58   : > { %740 = vadd.xlane.f32.xlu2 %v739_v9 }
  0x59   : > { %737 = vadd.xlane.f32.xlu1 %v736_v10 }
  0x5a   : > { %734 = vadd.xlane.f32.xlu0 %v733_v11 }
  0x62   : > { %743 = vadd.xlane.f32.xlu0 %v742_v16 }
  0xab   : > { %v622_v19 = vpop.xlane.xlu2 %621 }
  0xac   : > { %v636_v21 = vadd.f32 %v622_v19, %v588_v17  ;;  %v616_v22 = vpop.xlane.xlu1 %615  ;;  %v1012_v19 = vld [vmem:[%s1841_s17] sm:$0xff] }
  0xad   : > { %v634_v23 = vadd.f32 %v616_v22, %v586_v18  ;;  %v610_v24 = vpop.xlane.xlu0 %609 }
  0xae   : > { %645 = vst.msk [vmem:[#allocation2 + $0x20] sm:$0xff] %vm519_vm0, %v636_v21  ;;  %v632_v25 = vadd.f32 %v610_v24, %v584_v20  ;;  %v875_v24 = vld [vmem:[%s1792_s19 + $0x38] sm:$0xff] }
  0xaf   : > { %643 = vst.msk [vmem:[#allocation2 + $0x10] sm:$0xff] %vm519_vm0, %v634_v23  ;;  %v1888_v40 = vmul.f32 0.5, %v875_v24 }
  0xb0   : > { %641 = vst.msk [vmem:[#allocation2] sm:$0xff] %vm519_vm0, %v632_v25 }
  0xb3   : > { %v625_v28 = vpop.xlane.xlu2 %624 }
  0xb4   : > { %v637_v29 = vadd.f32 %v625_v28, %v589_v26  ;;  %v619_v30 = vpop.xlane.xlu1 %618 }
  0xb5   : > { %v1786_v31 = vld [vmem:[#allocation2 + $0x20] sm:$0xff]  ;;  %v635_v32 = vadd.f32 %v619_v30, %v587_v27  ;;  %v613_v33 = vpop.xlane.xlu0 %612 }
  0xb6   : > { %1364 = vrsqrt.f32 %v1786_v31  ;;  %v1795_v34 = vld [vmem:[#allocation2 + $0x10] sm:$0xff]  ;;  %646 = vst.msk [vmem:[#allocation2 + $0x28] sm:$0xff] %vm519_vm0, %v637_v29  ;;  %v633_v38 = vadd.f32 %v613_v33, %v585_v35  ;;  %vm827_vm3 = vcmp.eq.f32.partialorder %v1786_v31, inf  ;;  %vm829_vm4 = vcmp.eq.f32.partialorder %v1786_v31, 0.0 }
  0xb7   : > { %1366 = vrsqrt.f32 %v1795_v34  ;;  %v1799_v36 = vld [vmem:[#allocation2] sm:$0xff]  ;;  %644 = vst.msk [vmem:[#allocation2 + $0x18] sm:$0xff] %vm519_vm0, %v635_v32  ;;  %v830_v10 = vand.u32 2147483648, %v1786_v31  ;;  %vm803_vm6 = vcmp.eq.f32.partialorder %v1795_v34, inf  ;;  %vm805_vm7 = vcmp.eq.f32.partialorder %v1795_v34, 0.0 }
  0xb8   : > { %1368 = vrsqrt.f32 %v1799_v36  ;;  %642 = vst.msk [vmem:[#allocation2 + $0x8] sm:$0xff] %vm519_vm0, %v633_v38  ;;  %v806_v14 = vand.u32 2147483648, %v1795_v34  ;;  %vm779_vm8 = vcmp.eq.f32.partialorder %v1799_v36, inf  ;;  %vm781_vm9 = vcmp.eq.f32.partialorder %v1799_v36, 0.0 }
  0xb9   : > { %v782_v28 = vand.u32 2147483648, %v1799_v36  ;;  %v1873_v33 = vmul.f32 0.5, %v1012_v19 }
  0xbb   : > { %v723_v43 = vpop.xlane.xlu2 %722 }
  0xbc   : > { %v1365_v44 = vpop.eup %1364  ;;  %v745_v46 = vadd.f32 %v723_v43, %v697_v39  ;;  %v631_v47 = vpop.xlane.xlu1 %630 }
  0xbd   : > { %v1367_v48 = vpop.eup %1366  ;;  %v821_v49 = vmul.f32 %v1365_v44, %v1786_v31  ;;  %v1813_v52 = vld [vmem:[#allocation2 + $0x28] sm:$0xff]  ;;  %v639_v53 = vadd.f32 %v631_v47, %v591_v41  ;;  %v628_v54 = vpop.xlane.xlu0 %627 }
  0xbe   : > { %v1369_v55 = vpop.eup %1368  ;;  %v797_v56 = vmul.f32 %v1367_v48, %v1795_v34  ;;  %1370 = vrsqrt.f32 %v1813_v52  ;;  %v1820_v59 = vld [vmem:[#allocation2 + $0x18] sm:$0xff]  ;;  %753 = vst.msk [vmem:[#allocation3] sm:$0xff] %vm519_vm0, %v745_v46  ;;  %v638_v8 = vadd.f32 %v628_v54, %v590_v63  ;;  %vm839_vm12 = vcmp.eq.f32.partialorder %v1813_v52, inf }
  0xbf   : > { %v822_v61 = vmul.f32 %v1365_v44, %v821_v49  ;;  %v773_v62 = vmul.f32 %v1369_v55, %v1799_v36  ;;  %1372 = vrsqrt.f32 %v1820_v59  ;;  %648 = vst.msk [vmem:[#allocation2 + $0x38] sm:$0xff] %vm519_vm0, %v639_v53  ;;  %v1847_v7 = vld [vmem:[#allocation2 + $0x8] sm:$0xff]  ;;  %vm841_vm14 = vcmp.eq.f32.partialorder %v1813_v52, 0.0 }
  0xc0   : > { %v798_v0 = vmul.f32 %v1367_v48, %v797_v56  ;;  %1374 = vrsqrt.f32 %v1847_v7  ;;  %647 = vst.msk [vmem:[#allocation2 + $0x30] sm:$0xff] %vm519_vm0, %v638_v8  ;;  %vm815_vm15 = vcmp.eq.f32.partialorder %v1820_v59, inf }
  0xc1   : > { %v823_v2 = vmul.f32 0.5, %v822_v61  ;;  %v774_v3 = vmul.f32 %v1369_v55, %v773_v62 }
  0xc2   : > { %v799_v6 = vmul.f32 0.5, %v798_v0 }
  0xc3   : > { %v824_v9 = vsub.f32 1.5, %v823_v2  ;;  %v775_v11 = vmul.f32 0.5, %v774_v3  ;;  %v732_v41 = vpop.xlane.xlu2 %731  ;;  %v700_v3 = vld [vmem:[#allocation3 + $0x18] sm:$0xff] }
  0xc4   : > { %v1371_v12 = vpop.eup %1370  ;;  %v800_v13 = vsub.f32 1.5, %v799_v6  ;;  %v729_v53 = vpop.xlane.xlu1 %728 }
  0xc5   : > { %v1373_v15 = vpop.eup %1372  ;;  %v825_v16 = vmul.f32 %v1365_v44, %v824_v9  ;;  %v776_v17 = vsub.f32 1.5, %v775_v11  ;;  %v833_v18 = vmul.f32 %v1371_v12, %v1813_v52  ;;  %v1858_v20 = vld [vmem:[#allocation3] sm:$0xff]  ;;  %v1860_v21 = vpop.xlane.xlu0 %725  ;;  %v818_v11 = vand.u32 2147483648, %v1820_v59 }
  0xc6   : > { %v801_v22 = vmul.f32 %v1367_v48, %v800_v13  ;;  %v809_v23 = vmul.f32 %v1373_v15, %v1820_v59  ;;  %1376 = vrsqrt.f32 %v1858_v20  ;;  %v1866_v25 = vld [vmem:[#allocation2 + $0x38] sm:$0xff]  ;;  %v1375_v35 = vpop.eup %1374 }
  0xc7   : > { %v826_v26 = vmul.f32 %v825_v16, %v1786_v31  ;;  %v777_v27 = vmul.f32 %v1369_v55, %v776_v17  ;;  %v834_v29 = vmul.f32 %v1371_v12, %v833_v18  ;;  %1378 = vrsqrt.f32 %v1866_v25  ;;  %v1905_v51 = vld [vmem:[#allocation2 + $0x30] sm:$0xff] }
  0xc8   : > { %v802_v30 = vmul.f32 %v801_v22, %v1795_v34  ;;  %v810_v32 = vmul.f32 %v1373_v15, %v809_v23  ;;  %v785_v46 = vmul.f32 %v1375_v35, %v1847_v7  ;;  %1380 = vrsqrt.f32 %v1905_v51 }
  0xc9   : > { %v828_v37 = vsel %vm827_vm3, %v1786_v31, %v826_v26  ;;  %v778_v38 = vmul.f32 %v777_v27, %v1799_v36  ;;  %v835_v39 = vmul.f32 0.5, %v834_v29  ;;  %vm891_vm3 = vcmp.ne.f32.partialorder %v1888_v40, %v1888_v40  ;;  %v698_v26 = vld [vmem:[#allocation3 + $0x8] sm:$0xff] }
  0xca   : > { %v831_v42 = vsel %vm829_vm4, %v830_v10, %v828_v37  ;;  %v804_v43 = vsel %vm803_vm6, %v1795_v34, %v802_v30  ;;  %v811_v44 = vmul.f32 0.5, %v810_v32  ;;  %v786_v56 = vmul.f32 %v1375_v35, %v785_v46 }
  0xcb   : > { %v896_v47 = vsel %vm888_vm1, %v831_v42, %v1807_v45  ;;  %v807_v48 = vsel %vm805_vm7, %v806_v14, %v804_v43  ;;  %v780_v31 = vsel %vm779_vm8, %v1799_v36, %v778_v38  ;;  %v836_v49 = vsub.f32 1.5, %v835_v39  ;;  %v699_v14 = vld [vmem:[#allocation3 + $0x10] sm:$0xff]  ;;  %v741_v27 = vpop.xlane.xlu2 %740  ;;  %v702_v39 = vld [vmem:[#allocation3 + $0x28] sm:$0xff] }
  0xcc   : > { %v1377_v54 = vpop.eup %1376  ;;  %904 = vst.msk [vmem:[%s1880_s18 + $0x20] sm:$0xff] %vm519_vm0, %v896_v47  ;;  %v894_v45 = vsel %vm886_vm2, %v807_v48, %v1810_v50  ;;  %v783_v34 = vsel %vm781_vm9, %v782_v28, %v780_v31  ;;  %v812_v55 = vsub.f32 1.5, %v811_v44  ;;  %v787_v62 = vmul.f32 0.5, %v786_v56  ;;  %v738_v38 = vpop.xlane.xlu1 %737  ;;  %v701_v48 = vld [vmem:[#allocation3 + $0x20] sm:$0xff] }
  0xcd   : > { %902 = vst.msk [vmem:[%s1880_s18 + $0x10] sm:$0xff] %vm519_vm0, %v894_v45  ;;  %v892_v58 = vsel %vm884_vm5, %v783_v34, %v1816_v57  ;;  %v837_v60 = vmul.f32 %v1371_v12, %v836_v49  ;;  %v917_v50 = vmul.f32 %v1377_v54, %v1858_v20  ;;  %v1379_v61 = vpop.eup %1378  ;;  %v842_v57 = vand.u32 2147483648, %v1813_v52  ;;  %v1932_v6 = vpop.xlane.xlu0 %734  ;;  %v704_v34 = vld [vmem:[#allocation3 + $0x38] sm:$0xff] }
  0xce   : > { %900 = vst.msk [vmem:[%s1880_s18] sm:$0xff] %vm519_vm0, %v892_v58  ;;  %v813_v36 = vmul.f32 %v1373_v15, %v812_v55  ;;  %v857_v2 = vmul.f32 %v1379_v61, %v1866_v25  ;;  %vm817_vm1 = vcmp.eq.f32.partialorder %v1820_v59, 0.0  ;;  %v788_v9 = vsub.f32 1.5, %v787_v62  ;;  %v1381_v28 = vpop.eup %1380 }
  0xcf   : > { %v838_v63 = vmul.f32 %v837_v60, %v1813_v52  ;;  %v918_v0 = vmul.f32 %v1377_v54, %v917_v50  ;;  %vm1028_vm2 = vcmp.ne.f32.partialorder %v1873_v33, %v1873_v33  ;;  %v748_v18 = vadd.f32 %v732_v41, %v700_v3 }
  0xd0   : > { %v814_v8 = vmul.f32 %v813_v36, %v1820_v59  ;;  %v858_v13 = vmul.f32 %v1379_v61, %v857_v2  ;;  %v789_v17 = vmul.f32 %v1375_v35, %v788_v9  ;;  %vm791_vm4 = vcmp.eq.f32.partialorder %v1847_v7, inf }
  0xd1   : > { %v840_v10 = vsel %vm839_vm12, %v1813_v52, %v838_v63  ;;  %v919_v12 = vmul.f32 0.5, %v918_v0  ;;  %v703_v52 = vld [vmem:[#allocation3 + $0x30] sm:$0xff]  ;;  %v747_v30 = vadd.f32 %v729_v53, %v699_v14  ;;  %v845_v37 = vmul.f32 %v1381_v28, %v1905_v51  ;;  %756 = vst.msk [vmem:[#allocation3 + $0x18] sm:$0xff] %vm519_vm0, %v748_v18 }
  0xd2   : > { %v843_v15 = vsel %vm841_vm14, %v842_v57, %v840_v10  ;;  %v816_v16 = vsel %vm815_vm15, %v1820_v59, %v814_v8  ;;  %v859_v24 = vmul.f32 0.5, %v858_v13  ;;  %v790_v29 = vmul.f32 %v789_v17, %v1847_v7  ;;  %v874_v53 = vld [vmem:[%s1792_s19 + $0x30] sm:$0xff]  ;;  %v1013_v13 = vld [vmem:[%s1841_s17 + $0x8] sm:$0xff] }
  0xd3   : > { %v897_v19 = vsel %vm889_vm10, %v843_v15, %v1829_v1  ;;  %v819_v22 = vsel %vm817_vm1, %v818_v11, %v816_v16  ;;  %v920_v23 = vsub.f32 1.5, %v919_v12  ;;  %v794_v1 = vand.u32 2147483648, %v1847_v7  ;;  %755 = vst.msk [vmem:[#allocation3 + $0x10] sm:$0xff] %vm519_vm0, %v747_v30  ;;  %v1014_v10 = vld [vmem:[%s1841_s17 + $0x10] sm:$0xff] }
  0xd4   : > { %905 = vst.msk [vmem:[%s1880_s18 + $0x28] sm:$0xff] %vm519_vm0, %v897_v19  ;;  %v895_v59 = vsel %vm887_vm11, %v819_v22, %v1833_v4  ;;  %v860_v35 = vsub.f32 1.5, %v859_v24  ;;  %v792_v41 = vsel %vm791_vm4, %v1847_v7, %v790_v29  ;;  %vm793_vm5 = vcmp.eq.f32.partialorder %v1847_v7, 0.0  ;;  %v1018_v14 = vld [vmem:[%s1841_s17 + $0x30] sm:$0xff] }
  0xd5   : > { %903 = vst.msk [vmem:[%s1880_s18 + $0x18] sm:$0xff] %vm519_vm0, %v895_v59  ;;  %v921_v32 = vmul.f32 %v1377_v54, %v920_v23  ;;  %v746_v4 = vadd.f32 %v1860_v21, %v698_v26  ;;  %v751_v42 = vadd.f32 %v741_v27, %v703_v52  ;;  %v795_v43 = vsel %vm793_vm5, %v794_v1, %v792_v41  ;;  %v744_v45 = vpop.xlane.xlu0 %743  ;;  %v1016_v23 = vld [vmem:[%s1841_s17 + $0x20] sm:$0xff] }
  0xd6   : > { %v861_v46 = vmul.f32 %v1379_v61, %v860_v35  ;;  %v846_v47 = vmul.f32 %v1381_v28, %v845_v37  ;;  %v893_v7 = vsel %vm885_vm13, %v795_v43, %v1835_v5  ;;  %vm923_vm6 = vcmp.eq.f32.partialorder %v1858_v20, inf }
  0xd7   : > { %v922_v44 = vmul.f32 %v921_v32, %v1858_v20  ;;  %v926_v31 = vand.u32 2147483648, %v1858_v20  ;;  %754 = vst.msk [vmem:[#allocation3 + $0x8] sm:$0xff] %vm519_vm0, %v746_v4  ;;  %v750_v21 = vadd.f32 %v738_v38, %v702_v39  ;;  %vm925_vm7 = vcmp.eq.f32.partialorder %v1858_v20, 0.0 }
  0xd8   : > { %901 = vst.msk [vmem:[%s1880_s18 + $0x8] sm:$0xff] %vm519_vm0, %v893_v7  ;;  %v862_v5 = vmul.f32 %v861_v46, %v1866_v25  ;;  %v847_v54 = vmul.f32 0.5, %v846_v47  ;;  %vm863_vm8 = vcmp.eq.f32.partialorder %v1866_v25, inf  ;;  %v866_v56 = vand.u32 2147483648, %v1866_v25 }
  0xd9   : > { %v924_v49 = vsel %vm923_vm6, %v1858_v20, %v922_v44  ;;  %759 = vst.msk [vmem:[#allocation3 + $0x30] sm:$0xff] %vm519_vm0, %v751_v42  ;;  %v749_v58 = vadd.f32 %v1932_v6, %v701_v48  ;;  %vm865_vm9 = vcmp.eq.f32.partialorder %v1866_v25, 0.0  ;;  %v882_v36 = vmul.f32 0.5, %v874_v53  ;;  %v1015_v6 = vld [vmem:[%s1841_s17 + $0x18] sm:$0xff] }
  0xda   : > { %v927_v55 = vsel %vm925_vm7, %v926_v31, %v924_v49  ;;  %v864_v60 = vsel %vm863_vm8, %v1866_v25, %v862_v5  ;;  %v848_v50 = vsub.f32 1.5, %v847_v54  ;;  %758 = vst.msk [vmem:[#allocation3 + $0x28] sm:$0xff] %vm519_vm0, %v750_v21  ;;  %v752_v62 = vadd.f32 %v744_v45, %v704_v34  ;;  %v2012_v25 = vld [vmem:[#allocation3 + $0x10] sm:$0xff] }
  0xdb   : > { %v1036_v20 = vsel %vm1028_vm2, %v927_v55, %v1873_v33  ;;  %v867_v61 = vsel %vm865_vm9, %v866_v56, %v864_v60  ;;  %v2006_v33 = vld [vmem:[#allocation3 + $0x18] sm:$0xff]  ;;  %757 = vst.msk [vmem:[#allocation3 + $0x20] sm:$0xff] %vm519_vm0, %v749_v58  ;;  %vm890_vm10 = vcmp.ne.f32.partialorder %v882_v36, %v882_v36  ;;  %vm851_vm11 = vcmp.eq.f32.partialorder %v1905_v51, inf }
  0xdc   : > { %1044 = vst.msk [vmem:[%s1981_s28] sm:$0xff] %vm519_vm0, %v1036_v20  ;;  %v899_v63 = vsel %vm891_vm3, %v867_v61, %v1888_v40  ;;  %v849_v57 = vmul.f32 %v1381_v28, %v848_v50  ;;  %1382 = vrsqrt.f32 %v2006_v33  ;;  %v854_v40 = vand.u32 2147483648, %v1905_v51 }
  0xdd   : > { %907 = vst.msk [vmem:[%s1880_s18 + $0x38] sm:$0xff] %vm519_vm0, %v899_v63  ;;  %1384 = vrsqrt.f32 %v2012_v25  ;;  %vm853_vm12 = vcmp.eq.f32.partialorder %v1905_v51, 0.0  ;;  %v2036_v16 = vmul.f32 0.5, %v1015_v6  ;;  %v2042_v22 = vmul.f32 0.5, %v1014_v10 }
  0xde   : > { %v850_v0 = vmul.f32 %v849_v57, %v1905_v51  ;;  %v2016_v2 = vld [vmem:[#allocation3 + $0x8] sm:$0xff]  ;;  %760 = vst.msk [vmem:[#allocation3 + $0x38] sm:$0xff] %vm519_vm0, %v752_v62  ;;  %v2047_v27 = vmul.f32 0.5, %v1013_v13  ;;  %v2049_v52 = vmul.f32 0.5, %v1018_v14  ;;  %vm959_vm14 = vcmp.eq.f32.partialorder %v2006_v33, inf }
  0xdf   : > { %1386 = vrsqrt.f32 %v2016_v2  ;;  %vm1031_vm13 = vcmp.ne.f32.partialorder %v2036_v16, %v2036_v16  ;;  %v962_v32 = vand.u32 2147483648, %v2006_v33  ;;  %v2061_v37 = vmul.f32 0.5, %v1016_v23 }
  0xe0   : > { %v852_v3 = vsel %vm851_vm11, %v1905_v51, %v850_v0  ;;  %v2025_v8 = vld [vmem:[#allocation3 + $0x30] sm:$0xff]  ;;  %v1017_v51 = vld [vmem:[%s1841_s17 + $0x28] sm:$0xff]  ;;  %vm961_vm15 = vcmp.eq.f32.partialorder %v2006_v33, 0.0  ;;  %vm1030_vm1 = vcmp.ne.f32.partialorder %v2042_v22, %v2042_v22  ;;  %vm947_vm2 = vcmp.eq.f32.partialorder %v2012_v25, inf }
  0xe1   : > { %v855_v9 = vsel %vm853_vm12, %v854_v40, %v852_v3  ;;  %1388 = vrsqrt.f32 %v2025_v8  ;;  %v2029_v11 = vld [vmem:[#allocation3 + $0x28] sm:$0xff]  ;;  %v2054_v30 = vmul.f32 0.5, %v1017_v51  ;;  %vm949_vm3 = vcmp.eq.f32.partialorder %v2012_v25, 0.0 }
  0xe2   : > { %v898_v12 = vsel %vm890_vm10, %v855_v9, %v882_v36  ;;  %1390 = vrsqrt.f32 %v2029_v11  ;;  %v1383_v15 = vpop.eup %1382  ;;  %v2039_v17 = vld [vmem:[#allocation3 + $0x20] sm:$0xff]  ;;  %v950_v43 = vand.u32 2147483648, %v2012_v25  ;;  %vm1029_vm4 = vcmp.ne.f32.partialorder %v2047_v27, %v2047_v27 }
  0xe3   : > { %906 = vst.msk [vmem:[%s1880_s18 + $0x30] sm:$0xff] %vm519_vm0, %v898_v12  ;;  %v1385_v18 = vpop.eup %1384  ;;  %v953_v19 = vmul.f32 %v1383_v15, %v2006_v33  ;;  %1392 = vrsqrt.f32 %v2039_v17  ;;  %vm935_vm5 = vcmp.eq.f32.partialorder %v2016_v2, inf  ;;  %vm937_vm6 = vcmp.eq.f32.partialorder %v2016_v2, 0.0 }
  0xe4   : > { %v941_v26 = vmul.f32 %v1385_v18, %v2012_v25  ;;  %v938_v7 = vand.u32 2147483648, %v2016_v2  ;;  %vm1034_vm7 = vcmp.ne.f32.partialorder %v2049_v52, %v2049_v52  ;;  %vm995_vm8 = vcmp.eq.f32.partialorder %v2025_v8, inf }
  0xe5   : > { %v1387_v24 = vpop.eup %1386  ;;  %v2051_v28 = vld [vmem:[#allocation3 + $0x38] sm:$0xff]  ;;  %v954_v59 = vmul.f32 %v1383_v15, %v953_v19  ;;  %vm997_vm9 = vcmp.eq.f32.partialorder %v2025_v8, 0.0  ;;  %v998_v55 = vand.u32 2147483648, %v2025_v8  ;;  %vm983_vm11 = vcmp.eq.f32.partialorder %v2029_v11, inf }
  0xe6   : > { %v929_v29 = vmul.f32 %v1387_v24, %v2016_v2  ;;  %1394 = vrsqrt.f32 %v2051_v28  ;;  %v942_v35 = vmul.f32 %v1385_v18, %v941_v26  ;;  %vm1032_vm12 = vcmp.ne.f32.partialorder %v2061_v37, %v2061_v37  ;;  %v1019_v26 = vld [vmem:[%s1841_s17 + $0x38] sm:$0xff] }
  0xe7   : > { %v1389_v1 = vpop.eup %1388  ;;  %v955_v39 = vmul.f32 0.5, %v954_v59  ;;  %vm985_vm10 = vcmp.eq.f32.partialorder %v2029_v11, 0.0 }
  0xe8   : > { %v1391_v38 = vpop.eup %1390  ;;  %v930_v41 = vmul.f32 %v1387_v24, %v929_v29  ;;  %v989_v4 = vmul.f32 %v1389_v1, %v2025_v8  ;;  %v943_v42 = vmul.f32 0.5, %v942_v35 }
  0xe9   : > { %v977_v44 = vmul.f32 %v1391_v38, %v2029_v11  ;;  %v1393_v46 = vpop.eup %1392  ;;  %v956_v47 = vsub.f32 1.5, %v955_v39 }
  0xea   : > { %v931_v48 = vmul.f32 0.5, %v930_v41  ;;  %v990_v31 = vmul.f32 %v1389_v1, %v989_v4  ;;  %v944_v21 = vsub.f32 1.5, %v943_v42  ;;  %v965_v5 = vmul.f32 %v1393_v46, %v2039_v17 }
  0xeb   : > { %v978_v49 = vmul.f32 %v1391_v38, %v977_v44  ;;  %v957_v54 = vmul.f32 %v1383_v15, %v956_v47  ;;  %v1027_v41 = vmul.f32 0.5, %v1019_v26 }
  0xec   : > { %v1395_v53 = vpop.eup %1394  ;;  %v932_v45 = vsub.f32 1.5, %v931_v48  ;;  %v991_v34 = vmul.f32 0.5, %v990_v31  ;;  %v945_v56 = vmul.f32 %v1385_v18, %v944_v21  ;;  %v966_v20 = vmul.f32 %v1393_v46, %v965_v5 }
  0xed   : > { %v979_v58 = vmul.f32 0.5, %v978_v49  ;;  %v1001_v60 = vmul.f32 %v1395_v53, %v2051_v28  ;;  %v958_v50 = vmul.f32 %v957_v54, %v2006_v33 }
  0xee   : > { %v933_v61 = vmul.f32 %v1387_v24, %v932_v45  ;;  %v992_v36 = vsub.f32 1.5, %v991_v34  ;;  %v946_v62 = vmul.f32 %v945_v56, %v2012_v25  ;;  %v967_v57 = vmul.f32 0.5, %v966_v20 }
  0xef   : > { %v980_v63 = vsub.f32 1.5, %v979_v58  ;;  %v960_v0 = vsel %vm959_vm14, %v2006_v33, %v958_v50  ;;  %v1002_v6 = vmul.f32 %v1395_v53, %v1001_v60  ;;  %vm2211_vm14 = vcmp.ne.f32.partialorder %v2054_v30, %v2054_v30 }
  0xf0   : > { %v934_v40 = vmul.f32 %v933_v61, %v2016_v2  ;;  %v993_v3 = vmul.f32 %v1389_v1, %v992_v36  ;;  %v963_v9 = vsel %vm961_vm15, %v962_v32, %v960_v0  ;;  %v948_v10 = vsel %vm947_vm2, %v2012_v25, %v946_v62 }
  0xf1   : > { %v981_v12 = vmul.f32 %v1391_v38, %v980_v63  ;;  %v968_v13 = vsub.f32 1.5, %v967_v57  ;;  %v1039_v14 = vsel %vm1031_vm13, %v963_v9, %v2036_v16  ;;  %v951_v15 = vsel %vm949_vm3, %v950_v43, %v948_v10 }
  0xf2   : > { %v936_v33 = vsel %vm935_vm5, %v2016_v2, %v934_v40  ;;  %v994_v51 = vmul.f32 %v993_v3, %v2025_v8  ;;  %1047 = vst.msk [vmem:[%s1981_s28 + $0x18] sm:$0xff] %vm519_vm0, %v1039_v14  ;;  %v1038_v18 = vsel %vm1030_vm1, %v951_v15, %v2042_v22  ;;  %v986_v22 = vand.u32 2147483648, %v2029_v11 }
  0xf3   : > { %v939_v19 = vsel %vm937_vm6, %v938_v7, %v936_v33  ;;  %v982_v16 = vmul.f32 %v981_v12, %v2029_v11  ;;  %v969_v25 = vmul.f32 %v1393_v46, %v968_v13  ;;  %1046 = vst.msk [vmem:[%s1981_s28 + $0x10] sm:$0xff] %vm519_vm0, %v1038_v18  ;;  %v1003_v2 = vmul.f32 0.5, %v1002_v6 }
  0xf4   : > { %v1037_v23 = vsel %vm1029_vm4, %v939_v19, %v2047_v27  ;;  %v996_v24 = vsel %vm995_vm8, %v2025_v8, %v994_v51  ;;  %vm971_vm13 = vcmp.eq.f32.partialorder %v2039_v17, inf  ;;  %v974_v8 = vand.u32 2147483648, %v2039_v17 }
  0xf5   : > { %1045 = vst.msk [vmem:[%s1981_s28 + $0x8] sm:$0xff] %vm519_vm0, %v1037_v23  ;;  %v999_v59 = vsel %vm997_vm9, %v998_v55, %v996_v24  ;;  %v984_v29 = vsel %vm983_vm11, %v2029_v11, %v982_v16  ;;  %v970_v27 = vmul.f32 %v969_v25, %v2039_v17  ;;  %v1004_v35 = vsub.f32 1.5, %v1003_v2 }
  0xf6   : > { %v1042_v1 = vsel %vm1034_vm7, %v999_v59, %v2049_v52  ;;  %v987_v32 = vsel %vm985_vm10, %v986_v22, %v984_v29  ;;  %vm973_vm15 = vcmp.eq.f32.partialorder %v2039_v17, 0.0  ;;  %vm1035_vm1 = vcmp.ne.f32.partialorder %v1027_v41, %v1027_v41 }
  0xf7   : > { %1050 = vst.msk [vmem:[%s1981_s28 + $0x30] sm:$0xff] %vm519_vm0, %v1042_v1  ;;  %v1041_v38 = vsel %vm2211_vm14, %v987_v32, %v2054_v30  ;;  %v972_v39 = vsel %vm971_vm13, %v2039_v17, %v970_v27  ;;  %v1005_v52 = vmul.f32 %v1395_v53, %v1004_v35  ;;  %vm1007_vm2 = vcmp.eq.f32.partialorder %v2051_v28, inf }
  0xf8   : > { %1049 = vst.msk [vmem:[%s1981_s28 + $0x28] sm:$0xff] %vm519_vm0, %v1041_v38  ;;  %v975_v11 = vsel %vm973_vm15, %v974_v8, %v972_v39  ;;  %v1010_v30 = vand.u32 2147483648, %v2051_v28  ;;  %vm1009_vm3 = vcmp.eq.f32.partialorder %v2051_v28, 0.0 }
  0xf9   : > { %v1040_v4 = vsel %vm1032_vm12, %v975_v11, %v2061_v37  ;;  %v1006_v42 = vmul.f32 %v1005_v52, %v2051_v28 }
  0xfa   : > { %1048 = vst.msk [vmem:[%s1981_s28 + $0x20] sm:$0xff] %vm519_vm0, %v1040_v4 }
  0xfb   : > { %v1008_v17 = vsel %vm1007_vm2, %v2051_v28, %v1006_v42 }
  0xfc   : > { %v1011_v43 = vsel %vm1009_vm3, %v1010_v30, %v1008_v17 }
  0xfd   : > { %v1043_v44 = vsel %vm1035_vm1, %v1011_v43, %v1027_v41 }
  0xfe   : > { %1051 = vst.msk [vmem:[%s1981_s28 + $0x38] sm:$0xff] %vm519_vm0, %v1043_v44 }
  0xff PF: > { %s24_s29 = sadd.s32 1, %s1540_s29   ;;  %s2212_s7 = sld [smem:[#allocation11_spill]] }
 0x100   : > { %p21_p0 = scmp.ge.s32.totalorder %s24_s29, 4   ;;  %s2213_s26 = sld [smem:[#allocation14_spill]] }
 0x101   : > { %s2214_s27 = sld [smem:[#allocation12_spill]]  ;;  %s2216_s24 = smov %s1524_s25 }
 0x102   : > { %s2215_s28 = sld [smem:[#allocation13_spill]]  ;;  %23 = sbr.rel (!%p21_p0) target bundleno = 9 (0x9), region = 137 }
 0x105   : > { %s2217_s25 = smov %s2212_s7 }
 0x107   :  { %1091 = vsyncpa [#allocation5], 1 }
 0x108   :  { %1093 = vsyncpa [#allocation5 + $0x1], 1 }
 0x109   :  { %1094 = vsyncpa [#allocation7], 1 }
 0x10a   :  { %1096 = vsyncpa [#allocation7 + $0x1], 1 }

</bundles_post_ra>
